<compile_context>
chip_gen: v6e
topology: v6e:2x2x1
jax: 0.10.0
libtpu: 0.0.40
codegen_flags: <defaults>
</compile_context>

<pallas_src>
import jax
import jax.numpy as jnp
from jax.experimental import pallas as pl
from jax.experimental.pallas import tpu as pltpu


def mlp_kernel(xT_ref, w1T_ref, b1_ref, w2T_ref, b2_ref, oT_ref):
    # Layer 1: [32, 5] bf16 @ [5, TILE_B] bf16 -> [32, TILE_B] f32 (MXU, f32 acc).
    hT = jnp.dot(w1T_ref[...], xT_ref[...], preferred_element_type=jnp.float32)
    # Bias + ReLU in f32 on the VPU (lane-broadcast of [32, 1]).
    hT = jnp.maximum(hT + b1_ref[...], 0.0)
    # Layer 2: [2, 32] f32 @ [32, TILE_B] f32 -> [2, TILE_B] f32.  Hidden stays
    # f32 (no bf16 re-round of the activation).
    yT = jnp.dot(w2T_ref[...], hT, preferred_element_type=jnp.float32)
    # bf16 output stream: halves the kernel's HBM write bytes.
    oT_ref[...] = (yT + b2_ref[...]).astype(oT_ref.dtype)


def wifi_threat_model(x, w1, b1, w2, b2, *, tile_b=32768):
    """x: [B, 5] f32; w1: [5, 32]; b1: [32]; w2: [32, 2]; b2: [2]. Returns [B, 2] f32."""
    B, in_f = x.shape
    hid = w1.shape[1]
    out_f = w2.shape[1]

    # --- batch tiling -------------------------------------------------------
    # tile_b must be a multiple of 128 (lane width).
    tile_b = max(128, (int(tile_b) // 128) * 128)
    b_lanes = 128 * pl.cdiv(B, 128)          # minimal lane-padded batch
    if b_lanes > 128:
        # Keep >= 2 grid steps so ("parallel",) can shard across the two
        # TensorCores on v7x (harmless elsewhere).
        half = 128 * pl.cdiv(b_lanes // 2, 128)
        tile_b = min(tile_b, half)
    else:
        tile_b = 128
    b_pad = tile_b * pl.cdiv(B, tile_b)
    grid = (b_pad // tile_b,)

    # --- layout plumbing (single fused transpose+cast+pad; ideally done by the
    # producer of x so this extra HBM pass disappears entirely) --------------
    xT = jnp.zeros((in_f, b_pad), jnp.bfloat16).at[:, :B].set(
        x.T.astype(jnp.bfloat16))                        # [5, B_pad]  bf16
    w1T = w1.T.astype(jnp.bfloat16)                      # [32, 5]     bf16
    w2T = w2.T.astype(jnp.float32)                       # [2, 32]     f32 (tiny)
    b1c = jnp.reshape(b1, (hid, 1)).astype(jnp.float32)      # [32, 1] f32
    b2c = jnp.reshape(b2, (out_f, 1)).astype(jnp.float32)    # [2, 1]  f32

    # Per-step VMEM ~ 64*tile_b (xT 2-buf, sublane-padded) + 64*tile_b (yT bf16
    # 2-buf) + 128*tile_b (hT f32) -> ~8 MiB at tile_b=32768.  32 MiB is a safe
    # portable cap (v7x physical VMEM is 64 MiB; v5e default scoped is 16 MiB).
    vmem_limit = min(48 * 1024 * 1024, max(32 * 1024 * 1024, 320 * tile_b))

    cost = pl.CostEstimate(
        flops=2 * b_pad * (in_f * hid + hid * out_f),
        transcendentals=0,
        bytes_accessed=(xT.size * 2 + w1T.size * 2 + w2T.size * 4
                        + b1c.size * 4 + b2c.size * 4 + b_pad * out_f * 2),
    )

    yT = pl.pallas_call(
        mlp_kernel,
        out_shape=jax.ShapeDtypeStruct((out_f, b_pad), jnp.bfloat16),
        grid=grid,
        in_specs=[
            pl.BlockSpec((in_f, tile_b), lambda i: (0, i)),   # xT tile (pipelined)
            pl.BlockSpec((hid, in_f), lambda i: (0, 0)),      # w1T (grid-invariant)
            pl.BlockSpec((hid, 1), lambda i: (0, 0)),         # b1
            pl.BlockSpec((out_f, hid), lambda i: (0, 0)),     # w2T
            pl.BlockSpec((out_f, 1), lambda i: (0, 0)),       # b2
        ],
        out_specs=pl.BlockSpec((out_f, tile_b), lambda i: (0, i)),
        compiler_params=pltpu.CompilerParams(
            dimension_semantics=("parallel",),
            vmem_limit_bytes=vmem_limit,
        ),
        cost_estimate=cost,
    )(xT, w1T, b1c, w2T, b2c)

    # Strip padding, back to [B, 2] f32.
    return yT[:, :B].T.astype(jnp.float32)


def init_params():
    # Deterministic init matching the PyTorch module's shapes:
    #   Linear(5, 32): W1 [5, 32], b1 [32]
    #   Linear(32, 2): W2 [32, 2], b2 [2]
    k = jax.random.PRNGKey(42)
    k1, k2, k3, k4 = jax.random.split(k, 4)
    w1 = jax.random.normal(k1, (5, 32), dtype=jnp.float32) * 0.1
    b1 = jax.random.normal(k2, (32,), dtype=jnp.float32) * 0.01
    w2 = jax.random.normal(k3, (32, 2), dtype=jnp.float32) * 0.1
    b2 = jax.random.normal(k4, (2,), dtype=jnp.float32) * 0.01
    return w1, b1, w2, b2


if __name__ == "__main__":
    key = jax.random.PRNGKey(0)
    batch = 8
    x = jax.random.normal(key, (batch, 5), dtype=jnp.float32)

    w1, b1, w2, b2 = init_params()

    out = wifi_threat_model(x, w1, b1, w2, b2)
    out = jax.block_until_ready(out)
    assert out.shape == (batch, 2)

    # Pure-JAX reference emulating the kernel's numerics exactly:
    # x and W1 are bf16-rounded, hidden activation stays f32, W2/b2 f32,
    # final output rounded to bf16 (the kernel's output stream dtype).
    xr = x.astype(jnp.bfloat16).astype(jnp.float32)
    w1r = w1.astype(jnp.bfloat16).astype(jnp.float32)
    h = jnp.maximum(xr @ w1r + b1[None, :], 0.0)
    ref = (h @ w2 + b2[None, :]).astype(jnp.bfloat16).astype(jnp.float32)

    assert jnp.allclose(out, ref, atol=2e-3, rtol=1e-2), (
        f"max abs err {jnp.max(jnp.abs(out - ref))}")

    print("KERNEL_OK")
</pallas_src>

<mosaic_0001>
module attributes {stable_mosaic.version = 11 : i64} {
  func.func @mlp_kernel(%arg0: i32, %arg1: memref<5x128xbf16, #tpu.memory_space<vmem>>, %arg2: memref<32x5xbf16, #tpu.memory_space<vmem>>, %arg3: memref<32x1xf32, #tpu.memory_space<vmem>>, %arg4: memref<2x32xf32, #tpu.memory_space<vmem>>, %arg5: memref<2x1xf32, #tpu.memory_space<vmem>>, %arg6: memref<2x128xbf16, #tpu.memory_space<vmem>>) attributes {dimension_semantics = [#tpu.dimension_semantics<parallel>], iteration_bounds = array<i64: 1>, scalar_prefetch = 0 : i64, scratch_operands = 0 : i64, tpu.core_type = #tpu.core_type<tc>, window_params = [{transform_indices = @transform_0, window_bounds = array<i64: 5, 128>}, {pipeline_mode = #tpu.pipeline_mode<synchronous>, transform_indices = @transform_1, window_bounds = array<i64: 32, 5>}, {pipeline_mode = #tpu.pipeline_mode<synchronous>, transform_indices = @transform_2, window_bounds = array<i64: 32, 1>}, {pipeline_mode = #tpu.pipeline_mode<synchronous>, transform_indices = @transform_3, window_bounds = array<i64: 2, 32>}, {pipeline_mode = #tpu.pipeline_mode<synchronous>, transform_indices = @transform_4, window_bounds = array<i64: 2, 1>}, {transform_indices = @transform_5, window_bounds = array<i64: 2, 128>}]} {
    %c0 = arith.constant 0 : index
    %c0_0 = arith.constant 0 : index
    %0 = vector.load %arg2[%c0, %c0_0] : memref<32x5xbf16, #tpu.memory_space<vmem>>, vector<32x5xbf16>
    %c0_1 = arith.constant 0 : index
    %c0_2 = arith.constant 0 : index
    %1 = vector.load %arg1[%c0_1, %c0_2] : memref<5x128xbf16, #tpu.memory_space<vmem>>, vector<5x128xbf16>
    %cst = arith.constant dense<0.000000e+00> : vector<32x128xf32>
    %2 = tpu.matmul %0, %1, %cst {dimension_numbers = #tpu.dot_dimension_numbers<[1], [0], [0], [1], [0, 0, 1, 1], [], []>} : vector<32x5xbf16>, vector<5x128xbf16>, vector<32x128xf32> -> vector<32x128xf32>
    %c0_3 = arith.constant 0 : index
    %c0_4 = arith.constant 0 : index
    %3 = vector.load %arg3[%c0_3, %c0_4] : memref<32x1xf32, #tpu.memory_space<vmem>>, vector<32x1xf32>
    %4 = vector.broadcast %3 : vector<32x1xf32> to vector<32x128xf32>
    %5 = arith.addf %2, %4 : vector<32x128xf32>
    %cst_5 = arith.constant 0.000000e+00 : f32
    %6 = vector.broadcast %cst_5 : f32 to vector<32x128xf32>
    %7 = arith.maximumf %5, %6 : vector<32x128xf32>
    %c0_6 = arith.constant 0 : index
    %c0_7 = arith.constant 0 : index
    %8 = vector.load %arg4[%c0_6, %c0_7] : memref<2x32xf32, #tpu.memory_space<vmem>>, vector<2x32xf32>
    %cst_8 = arith.constant dense<0.000000e+00> : vector<2x128xf32>
    %9 = tpu.matmul %8, %7, %cst_8 {dimension_numbers = #tpu.dot_dimension_numbers<[1], [0], [0], [1], [0, 0, 1, 1], [], []>} : vector<2x32xf32>, vector<32x128xf32>, vector<2x128xf32> -> vector<2x128xf32>
    %c0_9 = arith.constant 0 : index
    %c0_10 = arith.constant 0 : index
    %10 = vector.load %arg5[%c0_9, %c0_10] : memref<2x1xf32, #tpu.memory_space<vmem>>, vector<2x1xf32>
    %11 = vector.broadcast %10 : vector<2x1xf32> to vector<2x128xf32>
    %12 = arith.addf %9, %11 : vector<2x128xf32>
    %13 = arith.truncf %12 : vector<2x128xf32> to vector<2x128xbf16>
    %c0_11 = arith.constant 0 : index
    %c0_12 = arith.constant 0 : index
    %14 = vector.load %arg6[%c0_11, %c0_12] : memref<2x128xbf16, #tpu.memory_space<vmem>>, vector<2x128xbf16>
    tpu.vector_store %arg6[%c0_11, %c0_12], %13 {strides = array<i32>} : memref<2x128xbf16, #tpu.memory_space<vmem>>, vector<2x128xbf16>,
    return
  }
  func.func @transform_0(%arg0: i32) -> (i32, i32) {
    %c0_i32 = arith.constant 0 : i32
    %c0_i32_0 = arith.constant 0 : i32
    return %c0_i32, %arg0 : i32, i32
  }
  func.func @transform_1(%arg0: i32) -> (i32, i32) {
    %c0_i32 = arith.constant 0 : i32
    %c0_i32_0 = arith.constant 0 : i32
    %c0_i32_1 = arith.constant 0 : i32
    return %c0_i32, %c0_i32_0 : i32, i32
  }
  func.func @transform_2(%arg0: i32) -> (i32, i32) {
    %c0_i32 = arith.constant 0 : i32
    %c0_i32_0 = arith.constant 0 : i32
    %c0_i32_1 = arith.constant 0 : i32
    return %c0_i32, %c0_i32_0 : i32, i32
  }
  func.func @transform_3(%arg0: i32) -> (i32, i32) {
    %c0_i32 = arith.constant 0 : i32
    %c0_i32_0 = arith.constant 0 : i32
    %c0_i32_1 = arith.constant 0 : i32
    return %c0_i32, %c0_i32_0 : i32, i32
  }
  func.func @transform_4(%arg0: i32) -> (i32, i32) {
    %c0_i32 = arith.constant 0 : i32
    %c0_i32_0 = arith.constant 0 : i32
    %c0_i32_1 = arith.constant 0 : i32
    return %c0_i32, %c0_i32_0 : i32, i32
  }
  func.func @transform_5(%arg0: i32) -> (i32, i32) {
    %c0_i32 = arith.constant 0 : i32
    %c0_i32_0 = arith.constant 0 : i32
    return %c0_i32, %arg0 : i32, i32
  }
}

</mosaic_0001>

<bundles_post_ra>
// kernel: tpu_custom_call.1
= control target key start
LH: loop header
LB: loop body
LE: loop exit
PB: predicated region body
PF: predicated region fallthrough
CT: control target
= control target key end

     0   :  { %vm68_vm0 = vcmask 1041408   ;;  %vm69_vm1 = vcmask 1042432   ;;  %v286_v2 = vmov 65535   ;;  %vm61_vm2 = vcmask 39936   ;;  %s353_s0 = inlined_call_operand.vmem [shape: bf16[5,128], index: 0, kind: input, shape index: {}]   ;;  %s354_s1 = inlined_call_operand.vmem [shape: bf16[32,5], index: 1, kind: input, shape index: {}]   ;;  %s355_s2 = inlined_call_operand.vmem [shape: f32[32,1], index: 2, kind: input, shape index: {}]   ;;  %s356_s3 = inlined_call_operand.vmem [shape: f32[2,32], index: 3, kind: input, shape index: {}]   ;;  %s357_s4 = inlined_call_operand.vmem [shape: f32[2,1], index: 4, kind: input, shape index: {}]   ;;  %s358_s5 = inlined_call_operand.hbm [shape: bf16[2,128], index: 5, kind: output, shape index: {}]  }
   0x1   :  { %v26_v0 = vld [vmem:[%s353_s0] sm:$0x7]  ;;  %v70_v3 = vsel %vm68_vm0, 4294967295, %v286_v2  ;;  %v30_v6 = vld [vmem:[%s355_s2 + $0x18] sm:$0xff]  ;;  %v28_v7 = vld [vmem:[%s355_s2 + $0x8] sm:$0xff]  ;;  %v287_v8 = vmov 0  }
   0x2   :  { %v262_v1 = vld [vmem:[%s354_s1] sm:$0xff]   ;;  %v71_v4 = vsel %vm69_vm1, %v70_v3, 0  ;;  %260 = vset.pattern.permute.xlu0 %v287_v8  ;;  %261 = vset.pattern.permute.xlu1 %v287_v8 }
   0x3   :  { %240 = vmatprep.mubr.msk.bf16.mxu0 %vm61_vm2, %v262_v1  ;;  %v73_v5 = vand.u32 %v71_v4, %v26_v0 }
   0x4   :  { %10 = vsyncpa [#allocation3], 0  ;;  %v263_v9 = vld [vmem:[%s354_s1 + $0x8] sm:$0xff]   ;;  %48 = vperm.xlu0 %260, %v30_v6   ;;  %v29_v10 = vld [vmem:[%s355_s2 + $0x10] sm:$0xff]  ;;  %38 = vperm.xlu1 %261, %v28_v7   ;;  %v288_v13 = vmov 0.0   ;;  %vm289_vm3 = vmmov 0  }
   0x5   :  { %238 = vmatprep.subr.bf16.mxu0 %v73_v5  ;;  %v27_v11 = vld [vmem:[%s355_s2] sm:$0xff]  ;;  %244 = vmatprep.subr.mxu1 %v288_v13  ;;  %vm135_vm4 = vcmask 261120  }
   0x6   :  { %239 = vmatpush3.bf16.msra.mxu0 %v73_v5  ;;  %v129_v12 = vld [vmem:[%s357_s4] sm:$0x3]  ;;  %252 = vmatprep.mubr.msk.f32.mxu1 %vm289_vm3, %v288_v13  ;;  %s290_s4 = smov [#allocation2]  }
   0x7   :  { %v128_v30 = vld [vmem:[%s356_s3] sm:$0x3]  ;;  %s217_s8 = sshll.u32 %s290_s4, 4  ;;  %s218_s8 = int_to_ptr.vmem [resolvable:$true] %s217_s8 }
   0x8   :  { %43 = vperm.xlu0 %260, %v29_v10   ;;  %33 = vperm.xlu1 %261, %v27_v11   ;;  %s264_s9 = scalar_lea.vmem %s218_s8, 16  ;;  %s268_s10 = scalar_lea.vmem %s218_s8, 32 }
   0x9   :  { %241 = vmatmul.mubr.msk.bf16.vlgmr.msra.gmra.mxu0 %vm61_vm2, %v263_v9  ;;  %p265_p0 = scmp.ne.s32.totalorder %s218_s8, %s264_s9  ;;  %p269_p1 = scmp.lt.s32.totalorder %s218_s8, %s218_s8 }
   0xa   :  { %p270_p2 = scmp.lt.s32.totalorder %s268_s10, %s264_s9 }
   0xc   :  { %132 = vperm.xlu0 %260, %v129_v12   ;;  %p271_p3 = por %p270_p2, %p269_p1 }
   0xe   :  { %p272_p4 = pnand %p271_p3, %p265_p0 }
  0x7f   :  { %v49_v14 = vpop.permute.xlu0 %48  ;;  %v39_v15 = vpop.permute.xlu1 %38 }
  0x83   :  { %v44_v18 = vpop.permute.xlu0 %43  ;;  %v34_v22 = vpop.permute.xlu1 %33 }
  0x87   :  { %v133_v31 = vpop.permute.xlu0 %132 }
  0xc9   :  { %v242_v16 = vpop.f32.mrf.mxu0 }
  0xca   :  { %v118_v20 = vadd.f32 %v242_v16, %v44_v18 }
  0xcb   :  { %v109_v17 = vpop.f32.mrf.mxu0 }
  0xcc   :  { %v126_v26 = vmax.f32 %v118_v20, 0.0  ;;  %v110_v27 = vadd.f32 %v109_v17, %v34_v22 }
  0xcd   :  { %v243_v19 = vpop.f32.mrf.mxu0 }
  0xce   :  { %v121_v21 = vadd.f32 %v243_v19, %v49_v14  ;;  %v124_v29 = vmax.f32 %v110_v27, 0.0 }
  0xcf   :  { %v112_v23 = vpop.f32.mrf.mxu0 }
  0xd0   :  { %v127_v24 = vmax.f32 %v121_v21, 0.0  ;;  %v113_v25 = vadd.f32 %v112_v23, %v39_v15 }
  0xd2   :  { %245 = vmatpush3.msra.mxu1 %v127_v24  ;;  %v125_v28 = vmax.f32 %v113_v25, 0.0 }
  0xd3   :  { %246 = vmatprep.subr.mxu1 %v288_v13 }
  0xd4   :  { %247 = vmatpush3.msra.mxu1 %v126_v26 }
  0xd5   :  { %248 = vmatprep.subr.mxu1 %v288_v13 }
  0xd6   :  { %249 = vmatpush3.msra.mxu1 %v125_v28 }
  0xd7   :  { %250 = vmatprep.subr.mxu1 %v288_v13 }
  0xd8   :  { %251 = vmatpush3.msra.mxu1 %v124_v29 }
  0xd9   :  { %253 = vmatmul.mubr.msk.f32.vlgmr.msra.gmra.mxu1 %vm135_vm4, %v128_v30 }
 0x199   :  { %v205_v32 = vpop.f32.mrf.mxu1 }
 0x19a   :  { %v206_v33 = vadd.f32 %v205_v32, %v133_v31 }
 0x19b   :  { %v254_v34 = vpop.f32.mrf.mxu1 }
 0x19c   :  { %v209_v35 = vpack.c.bf16 %v206_v33, %v206_v33 }
 0x19e   :  { %210 = vst [vmem:[#allocation2] sm:$0x1] %v209_v35 }
 0x19f   :  { %275 = shalt.err (!%p272_p4)
}
 0x1a0   :  { %220 = dma.vmem_to_hbm [thread:$0]  %s218_s8, 16, %s358_s5, [#allocation3]  }
 0x1a1   :  { %284 = dma.done.wait [#allocation3], 16  }
 0x1a2   :  { %285 = vsyncadd [#allocation3], 4294967280 }
 0x1a3   :  { %224 = vsyncpa [#allocation3], 1 }

</bundles_post_ra>
